<compile_context>
chip_gen: v7x
topology: tpu7x:2x2x1
jax: 0.10.0
libtpu: 0.0.40
codegen_flags: <defaults>
</compile_context>

<pallas_src>
import math

import jax
import jax.numpy as jnp
from jax.experimental import pallas as pl
from jax.experimental.pallas import tpu as pltpu


def _ffn_kernel(x_ref, w1_ref, w2_ref, o_ref):
    # x_ref : [TILE_M, d_model] f32 activation row-tile
    # w1_ref: [d_model, d_ff]   bf16, VMEM-resident across all grid steps
    # w2_ref: [d_ff, d_model]   bf16, VMEM-resident across all grid steps
    # o_ref : [TILE_M, d_model]
    x = x_ref[...].astype(jnp.bfloat16)                                 # cast for MXU
    h = jnp.dot(x, w1_ref[...], preferred_element_type=jnp.float32)    # [TILE_M, d_ff], f32 acc (MXU)
    h = jnp.maximum(h, 0.0)                                             # ReLU in f32 (VPU)
    h = h.astype(jnp.bfloat16)                                          # cast for 2nd MXU pass
    out = jnp.dot(h, w2_ref[...], preferred_element_type=jnp.float32)  # [TILE_M, d_model], f32 acc (MXU)
    o_ref[...] = out.astype(o_ref.dtype)


def _round_up(x, m):
    return (x + m - 1) // m * m


def prepare_ffn_weights(W1, W2):
    """Call ONCE at model init (not per forward): transpose torch-layout weights to
    matmul-ready layout and cast to bf16 (halves resident VMEM, matches MXU rate)."""
    w1_t = jnp.asarray(W1).T.astype(jnp.bfloat16)   # [d_model, d_ff]
    w2_t = jnp.asarray(W2).T.astype(jnp.bfloat16)   # [d_ff, d_model]
    return w1_t, w2_t


def poswise_feed_forward(inputs, w1_t, w2_t, tile_m=256):
    """
    inputs: [B, L, d_model] float32
    w1_t:   [d_model, d_ff] bf16   (pre-transposed nn.Linear(d_model, d_ff) weight)
    w2_t:   [d_ff, d_model] bf16   (pre-transposed nn.Linear(d_ff, d_model) weight)
    returns [B, L, d_model] == relu(inputs @ W1.T) @ W2.T
    """
    B, L, d_model = inputs.shape
    d_ff = w1_t.shape[1]

    # Flatten (B, L) -> rows; tile rows via the grid.
    M = B * L
    tile_m = max(8, min(tile_m, _round_up(M, 8)))   # clamp for small inputs, keep 8-sublane alignment
    M_pad = _round_up(M, tile_m)
    x = inputs.reshape(M, d_model)
    if M_pad != M:
        x = jnp.pad(x, ((0, M_pad - M), (0, 0)))    # relu(0 @ W1) @ W2 == 0; sliced off below

    grid = (M_pad // tile_m,)

    # Advisory cost for the XLA scheduler around this custom call.
    flops = 4 * M_pad * d_model * d_ff              # two matmuls, 2*m*n*k each
    bytes_accessed = (M_pad * d_model * 4 * 2       # x in + out
                      + (w1_t.size + w2_t.size) * 2)  # bf16 weights

    # VMEM budget: resident bf16 weights + double-buffered f32 in/out tiles + h intermediate.
    vmem_est = ((w1_t.size + w2_t.size) * 2
                + 2 * 2 * tile_m * d_model * 4
                + tile_m * d_ff * 4)
    vmem_limit = int(min(64 * 1024 * 1024, max(32 * 1024 * 1024, 2 * vmem_est)))

    out = pl.pallas_call(
        _ffn_kernel,
        out_shape=jax.ShapeDtypeStruct((M_pad, d_model), inputs.dtype),
        grid_spec=pltpu.PrefetchScalarGridSpec(
            num_scalar_prefetch=0,
            grid=grid,
            in_specs=[
                pl.BlockSpec((tile_m, d_model), lambda i: (i, 0)),  # activation row-tile
                pl.BlockSpec((d_model, d_ff), lambda i: (0, 0)),    # W1^T, resident
                pl.BlockSpec((d_ff, d_model), lambda i: (0, 0)),    # W2^T, resident
            ],
            out_specs=pl.BlockSpec((tile_m, d_model), lambda i: (i, 0)),
        ),
        compiler_params=pltpu.CompilerParams(
            dimension_semantics=("parallel",),
            vmem_limit_bytes=vmem_limit,
        ),
        cost_estimate=pl.CostEstimate(
            flops=flops, transcendentals=0, bytes_accessed=bytes_accessed),
    )(x, w1_t, w2_t)

    return out[:M].reshape(B, L, d_model)


if __name__ == "__main__":
    # Small config, lane-dense features (d_model multiple of 128) per the perf review.
    B, L, d_model, d_ff = 2, 8, 128, 256

    key = jax.random.PRNGKey(0)
    k1, k2, k3 = jax.random.split(key, 3)

    inputs = jax.random.normal(k1, (B, L, d_model), dtype=jnp.float32)

    # torch nn.Linear weight layout: [out_features, in_features]
    s1 = 1.0 / math.sqrt(d_model)
    W1 = jax.random.uniform(k2, (d_ff, d_model), jnp.float32, -s1, s1)
    s2 = 1.0 / math.sqrt(d_ff)
    W2 = jax.random.uniform(k3, (d_model, d_ff), jnp.float32, -s2, s2)

    # One-time weight prep (outside the per-call path).
    w1_t, w2_t = prepare_ffn_weights(W1, W2)

    out = poswise_feed_forward(inputs, w1_t, w2_t)
    out = jax.block_until_ready(out)

    ref = jnp.maximum(inputs @ W1.T, 0.0) @ W2.T

    assert out.shape == (B, L, d_model)
    # bf16 MXU operands with f32 accumulation -> slightly looser tolerance than pure f32.
    max_err = jnp.max(jnp.abs(out - ref))
    assert jnp.allclose(out, ref, atol=5e-2, rtol=5e-2), f"mismatch vs reference, max abs err={max_err}"
    print("KERNEL_OK")
</pallas_src>

<mosaic_0001>
module attributes {stable_mosaic.version = 11 : i64} {
  func.func @_ffn_kernel(%arg0: i32, %arg1: memref<16x128xf32, #tpu.memory_space<vmem>>, %arg2: memref<128x256xbf16, #tpu.memory_space<vmem>>, %arg3: memref<256x128xbf16, #tpu.memory_space<vmem>>, %arg4: memref<16x128xf32, #tpu.memory_space<vmem>>) attributes {dimension_semantics = [#tpu.dimension_semantics<parallel>], iteration_bounds = array<i64: 1>, scalar_prefetch = 0 : i64, scratch_operands = 0 : i64, tpu.core_type = #tpu.core_type<tc>, window_params = [{transform_indices = @transform_0, window_bounds = array<i64: 16, 128>}, {pipeline_mode = #tpu.pipeline_mode<synchronous>, transform_indices = @transform_1, window_bounds = array<i64: 128, 256>}, {pipeline_mode = #tpu.pipeline_mode<synchronous>, transform_indices = @transform_2, window_bounds = array<i64: 256, 128>}, {transform_indices = @transform_3, window_bounds = array<i64: 16, 128>}]} {
    %c0 = arith.constant 0 : index
    %c0_0 = arith.constant 0 : index
    %0 = vector.load %arg1[%c0, %c0_0] : memref<16x128xf32, #tpu.memory_space<vmem>>, vector<16x128xf32>
    %1 = arith.truncf %0 : vector<16x128xf32> to vector<16x128xbf16>
    %c0_1 = arith.constant 0 : index
    %c0_2 = arith.constant 0 : index
    %2 = vector.load %arg2[%c0_1, %c0_2] : memref<128x256xbf16, #tpu.memory_space<vmem>>, vector<128x256xbf16>
    %cst = arith.constant dense<0.000000e+00> : vector<16x256xf32>
    %3 = tpu.matmul %1, %2, %cst {dimension_numbers = #tpu.dot_dimension_numbers<[1], [0], [0], [1], [0, 0, 1, 1], [], []>} : vector<16x128xbf16>, vector<128x256xbf16>, vector<16x256xf32> -> vector<16x256xf32>
    %cst_3 = arith.constant 0.000000e+00 : f32
    %4 = vector.broadcast %cst_3 : f32 to vector<16x256xf32>
    %5 = arith.maximumf %3, %4 : vector<16x256xf32>
    %6 = arith.truncf %5 : vector<16x256xf32> to vector<16x256xbf16>
    %c0_4 = arith.constant 0 : index
    %c0_5 = arith.constant 0 : index
    %7 = vector.load %arg3[%c0_4, %c0_5] : memref<256x128xbf16, #tpu.memory_space<vmem>>, vector<256x128xbf16>
    %cst_6 = arith.constant dense<0.000000e+00> : vector<16x128xf32>
    %8 = tpu.matmul %6, %7, %cst_6 {dimension_numbers = #tpu.dot_dimension_numbers<[1], [0], [0], [1], [0, 0, 1, 1], [], []>} : vector<16x256xbf16>, vector<256x128xbf16>, vector<16x128xf32> -> vector<16x128xf32>
    %c0_7 = arith.constant 0 : index
    %c0_8 = arith.constant 0 : index
    %9 = vector.load %arg4[%c0_7, %c0_8] : memref<16x128xf32, #tpu.memory_space<vmem>>, vector<16x128xf32>
    tpu.vector_store %arg4[%c0_7, %c0_8], %8 {strides = array<i32>} : memref<16x128xf32, #tpu.memory_space<vmem>>, vector<16x128xf32>,
    return
  }
  func.func @transform_0(%arg0: i32) -> (i32, i32) {
    %c0_i32 = arith.constant 0 : i32
    %c0_i32_0 = arith.constant 0 : i32
    return %arg0, %c0_i32 : i32, i32
  }
  func.func @transform_1(%arg0: i32) -> (i32, i32) {
    %c0_i32 = arith.constant 0 : i32
    %c0_i32_0 = arith.constant 0 : i32
    %c0_i32_1 = arith.constant 0 : i32
    return %c0_i32, %c0_i32_0 : i32, i32
  }
  func.func @transform_2(%arg0: i32) -> (i32, i32) {
    %c0_i32 = arith.constant 0 : i32
    %c0_i32_0 = arith.constant 0 : i32
    %c0_i32_1 = arith.constant 0 : i32
    return %c0_i32, %c0_i32_0 : i32, i32
  }
  func.func @transform_3(%arg0: i32) -> (i32, i32) {
    %c0_i32 = arith.constant 0 : i32
    %c0_i32_0 = arith.constant 0 : i32
    return %arg0, %c0_i32 : i32, i32
  }
}

</mosaic_0001>

<bundles_post_ra>
// kernel: tpu_custom_call.1
= control target key start
LH: loop header
LB: loop body
LE: loop exit
PB: predicated region body
PF: predicated region fallthrough
CT: control target
= control target key end

     0   :  { %8 = vsyncpa [#allocation3], 0  ;;  %s684_s0 = inlined_call_operand.hbm [shape: f32[16,128], index: 0, kind: input, shape index: {}]   ;;  %s685_s1 = inlined_call_operand.hbm [shape: bf16[128,256], index: 1, kind: input, shape index: {}]   ;;  %s686_s2 = inlined_call_operand.hbm [shape: bf16[256,128], index: 2, kind: input, shape index: {}]   ;;  %s687_s3 = inlined_call_operand.hbm [shape: f32[16,128], index: 3, kind: output, shape index: {}]  }
   0x1   :  { %9 = vsyncpa [#allocation6], 0 }
   0x2   :  { %10 = vsyncpa [#allocation4], 0  ;;  %s591_s12 = smov [#allocation5]   ;;  %s592_s14 = smov [#allocation2]  }
   0x3   :  { %s28_s13 = sshll.u32 %s591_s12, 4  ;;  %s16_s15 = sshll.u32 %s592_s14, 4  ;;  %s29_s13 = int_to_ptr.vmem [resolvable:$true] %s28_s13  ;;  %s620_s15 = int_to_ptr.vmem [resolvable:$true] %s16_s15 }
   0x4   :  { %s497_s18 = scalar_lea.hbm %s685_s1, 2048 }
   0x5   :  { %p498_p0 = scmp.ne.s32.totalorder %s685_s1, %s497_s18  ;;  %p501_p1 = scmp.lt.u32.totalorder %s497_s18, %s685_s1 }
   0x7   :  { %p503_p2 = pnand %p501_p1, %p498_p0 }
   0x9   :  { %506 = shalt.err (!%p503_p2)
}
   0xa   :  { %s507_s23 = scalar_lea.vmem %s29_s13, 2048  ;;  %p512_p4 = scmp.lt.s32.totalorder %s29_s13, %s29_s13 }
   0xb   :  { %p508_p3 = scmp.ne.s32.totalorder %s29_s13, %s507_s23  ;;  %p513_p5 = scmp.lt.s32.totalorder %s507_s23, %s507_s23 }
   0xd   :  { %p514_p6 = por %p513_p5, %p512_p4 }
   0xf   :  { %p515_p7 = pnand %p514_p6, %p508_p3 }
  0x11   :  { %518 = shalt.err (!%p515_p7)
}
  0x12   :  { %s593_s24 = smov 128   ;;  %s594_s25 = smov 8  }
  0x13   :  { %34 = dma.hbm_to_vmem [thread:$0]  %s685_s1, 2048, %s29_s13, [#allocation6], %s593_s24, %s593_s24, %s594_s25  }
  0x14   :  { %s519_s30 = scalar_lea.hbm %s684_s0, 256 }
  0x15   :  { %p520_p8 = scmp.ne.s32.totalorder %s684_s0, %s519_s30  ;;  %p523_p9 = scmp.lt.u32.totalorder %s519_s30, %s684_s0 }
  0x17   :  { %p525_p10 = pnand %p523_p9, %p520_p8 }
  0x19   :  { %528 = shalt.err (!%p525_p10)
}
  0x1a   :  { %s529_s8 = scalar_lea.vmem %s620_s15, 256  ;;  %p534_p12 = scmp.lt.s32.totalorder %s620_s15, %s620_s15 }
  0x1b   :  { %p530_p11 = scmp.ne.s32.totalorder %s620_s15, %s529_s8  ;;  %p535_p13 = scmp.lt.s32.totalorder %s529_s8, %s529_s8 }
  0x1d   :  { %p536_p0 = por %p535_p13, %p534_p12 }
  0x1f   :  { %p537_p1 = pnand %p536_p0, %p530_p11 }
  0x21   :  { %540 = shalt.err (!%p537_p1)
}
  0x22   :  { %22 = dma.hbm_to_vmem [thread:$0]  %s684_s0, 256, %s620_s15, [#allocation3], %s593_s24, %s593_s24, %s594_s25  }
  0x23   :  { %s595_s10 = smov [#allocation7]   ;;  %s541_s14 = scalar_lea.hbm %s686_s2, 2048 }
  0x24   :  { %s40_s11 = sshll.u32 %s595_s10, 4  ;;  %p542_p2 = scmp.ne.s32.totalorder %s686_s2, %s541_s14  ;;  %s41_s11 = int_to_ptr.vmem [resolvable:$true] %s40_s11 }
  0x25   :  { %p545_p3 = scmp.lt.u32.totalorder %s541_s14, %s686_s2 }
  0x27   :  { %p547_p4 = pnand %p545_p3, %p542_p2 }
  0x29   :  { %550 = shalt.err (!%p547_p4)
}
  0x2a   :  { %s551_s20 = scalar_lea.vmem %s41_s11, 2048  ;;  %p556_p6 = scmp.lt.s32.totalorder %s41_s11, %s41_s11 }
  0x2b   :  { %p552_p5 = scmp.ne.s32.totalorder %s41_s11, %s551_s20  ;;  %p557_p7 = scmp.lt.s32.totalorder %s551_s20, %s551_s20 }
  0x2d   :  { %p558_p8 = por %p557_p7, %p556_p6 }
  0x2f   :  { %p559_p9 = pnand %p558_p8, %p552_p5 }
  0x31   :  { %562 = shalt.err (!%p559_p9)
}
  0x32   :  { %s596_s0 = smov 64   ;;  %s597_s15 = smov 4  }
  0x33   :  { %46 = dma.hbm_to_vmem [thread:$0]  %s686_s2, 2048, %s41_s11, [#allocation6], %s596_s0, %s596_s0, %s597_s15  }
  0x34   :  { %585 = dma.done.wait [#allocation3], 256  }
  0x35   :  { %586 = vsyncadd [#allocation3], 4294967040 }
  0x36   :  { %587 = dma.done.wait [#allocation6], 4096  }
  0x37   :  { %588 = vsyncadd [#allocation6], 4294963200  ;;  %v598_v0 = vmov 0   ;;  %v457_v1 = vld [vmem:[#allocation5 + $0x4] ss:$8 sps:$4 sm:$0xff]   ;;  %v485_v16 = vld [vmem:[#allocation7 + $0x50] sm:$0xff]  }
  0x38   :  { %188 = vmatprep.mubr.bf16.mxu0 %v598_v0  ;;  %v459_v2 = vld [vmem:[#allocation5] ss:$8 sps:$4 sm:$0xff]   ;;  %156 = vmatprep.subr.bf16.mxu0 %v457_v1  ;;  %v460_v3 = vld [vmem:[#allocation5 + $0x14] ss:$8 sps:$4 sm:$0xff]   ;;  %v462_v4 = vld [vmem:[#allocation5 + $0x10] ss:$8 sps:$4 sm:$0xff]  }
  0x39   :  { %157 = vmatpush1.bf16.msra.mxu0 %v459_v2  ;;  %v463_v5 = vld [vmem:[#allocation5 + $0x24] ss:$8 sps:$4 sm:$0xff]   ;;  %v465_v6 = vld [vmem:[#allocation5 + $0x20] ss:$8 sps:$4 sm:$0xff]   ;;  %v466_v7 = vld [vmem:[#allocation5 + $0x34] ss:$8 sps:$4 sm:$0xff]  }
  0x3a   :  { %158 = vmatprep.subr.bf16.mxu0 %v460_v3  ;;  %v468_v8 = vld [vmem:[#allocation5 + $0x30] ss:$8 sps:$4 sm:$0xff]   ;;  %v469_v9 = vld [vmem:[#allocation5 + $0x44] ss:$8 sps:$4 sm:$0xff]   ;;  %v471_v11 = vld [vmem:[#allocation5 + $0x40] ss:$8 sps:$4 sm:$0xff]  }
  0x3b   :  { %v481_v10 = vld [vmem:[#allocation7 + $0x40] sm:$0xff]   ;;  %v472_v13 = vld [vmem:[#allocation5 + $0x54] ss:$8 sps:$4 sm:$0xff]   ;;  %v483_v14 = vld [vmem:[#allocation7 + $0x48] sm:$0xff]   ;;  %s599_s2 = smov [#allocation8]  }
  0x3c   :  { %v482_v12 = vld [vmem:[#allocation7] sm:$0xff]   ;;  %426 = vmatprep.subr.bf16.mxu1 %v481_v10  ;;  %v484_v15 = vld [vmem:[#allocation7 + $0x8] sm:$0xff]   ;;  %v474_v17 = vld [vmem:[#allocation5 + $0x50] ss:$8 sps:$4 sm:$0xff]   ;;  %s381_s23 = sshll.u32 %s599_s2, 4  ;;  %s382_s23 = int_to_ptr.vmem [resolvable:$true] %s381_s23 }
  0x3d   :  { %159 = vmatpush1.bf16.msra.mxu0 %v462_v4  ;;  %427 = vmatpush3.bf16.msra.mxu1 %v482_v12  ;;  %v475_v18 = vld [vmem:[#allocation5 + $0x64] ss:$8 sps:$4 sm:$0xff]   ;;  %v486_v19 = vld [vmem:[#allocation7 + $0x10] sm:$0xff]   ;;  %v487_v20 = vld [vmem:[#allocation7 + $0x58] sm:$0xff]   ;;  %s563_s26 = scalar_lea.vmem %s382_s23, 256  ;;  %p568_p11 = scmp.lt.s32.totalorder %s382_s23, %s382_s23 }
  0x3e   :  { %160 = vmatprep.subr.bf16.mxu0 %v463_v5  ;;  %428 = vmatprep.subr.bf16.mxu1 %v483_v14  ;;  %v477_v21 = vld [vmem:[#allocation5 + $0x60] ss:$8 sps:$4 sm:$0xff]   ;;  %v478_v22 = vld [vmem:[#allocation5 + $0x74] ss:$8 sps:$4 sm:$0xff]   ;;  %v480_v25 = vld [vmem:[#allocation5 + $0x70] ss:$8 sps:$4 sm:$0xff]   ;;  %p564_p10 = scmp.ne.s32.totalorder %s382_s23, %s563_s26  ;;  %p569_p12 = scmp.lt.s32.totalorder %s563_s26, %s563_s26 }
  0x3f   :  { %v488_v23 = vld [vmem:[#allocation7 + $0x18] sm:$0xff]   ;;  %v489_v24 = vld [vmem:[#allocation7 + $0x60] sm:$0xff]   ;;  %v57_v26 = vld [vmem:[#allocation2] sm:$0xff] }
  0x40   :  { %v58_v27 = vld [vmem:[#allocation2 + $0x8] sm:$0xff]  ;;  %v490_v28 = vld [vmem:[#allocation7 + $0x20] sm:$0xff]   ;;  %v491_v29 = vld [vmem:[#allocation7 + $0x68] sm:$0xff]   ;;  %p570_p13 = por %p569_p12, %p568_p11 }
  0x41   :  { %161 = vmatpush1.bf16.msra.mxu0 %v465_v6  ;;  %429 = vmatpush3.bf16.msra.mxu1 %v484_v15  ;;  %v59_v30 = vpack.c.bf16 %v58_v27, %v57_v26  ;;  %v492_v31 = vld [vmem:[#allocation7 + $0x28] sm:$0xff]   ;;  %v493_v32 = vld [vmem:[#allocation7 + $0x70] sm:$0xff]   ;;  %v495_v34 = vld [vmem:[#allocation7 + $0x78] sm:$0xff]  }
  0x42   :  { %162 = vmatprep.subr.bf16.mxu0 %v466_v7  ;;  %430 = vmatprep.subr.bf16.mxu1 %v485_v16  ;;  %v494_v33 = vld [vmem:[#allocation7 + $0x30] sm:$0xff]   ;;  %v496_v35 = vld [vmem:[#allocation7 + $0x38] sm:$0xff]   ;;  %p571_p0 = pnand %p570_p13, %p564_p10 }
  0x45   :  { %163 = vmatpush1.bf16.msra.mxu0 %v468_v8  ;;  %431 = vmatpush3.bf16.msra.mxu1 %v486_v19 }
  0x46   :  { %164 = vmatprep.subr.bf16.mxu0 %v469_v9  ;;  %432 = vmatprep.subr.bf16.mxu1 %v487_v20 }
  0x49   :  { %165 = vmatpush1.bf16.msra.mxu0 %v471_v11  ;;  %433 = vmatpush3.bf16.msra.mxu1 %v488_v23 }
  0x4a   :  { %166 = vmatprep.subr.bf16.mxu0 %v472_v13  ;;  %434 = vmatprep.subr.bf16.mxu1 %v489_v24 }
  0x4d   :  { %167 = vmatpush1.bf16.msra.mxu0 %v474_v17  ;;  %435 = vmatpush3.bf16.msra.mxu1 %v490_v28 }
  0x4e   :  { %168 = vmatprep.subr.bf16.mxu0 %v475_v18  ;;  %436 = vmatprep.subr.bf16.mxu1 %v491_v29 }
  0x51   :  { %169 = vmatpush1.bf16.msra.mxu0 %v477_v21  ;;  %437 = vmatpush3.bf16.msra.mxu1 %v492_v31 }
  0x52   :  { %170 = vmatprep.subr.bf16.mxu0 %v478_v22  ;;  %438 = vmatprep.subr.bf16.mxu1 %v493_v32 }
  0x55   :  { %171 = vmatpush1.bf16.msra.mxu0 %v480_v25  ;;  %439 = vmatpush3.bf16.msra.mxu1 %v494_v33 }
  0x56   :  { %440 = vmatprep.subr.bf16.mxu1 %v495_v34 }
  0x58   :  { %189 = vmatmul.mubr.bf16.vlgmr.msra.gmra.mrb[0].mxu0 %v59_v30 }
  0x59   :  { %441 = vmatpush3.bf16.msra.mxu1 %v496_v35 }
 0x12b   :  { %v190_v36 = vpop.f32.mrb[0].mxu0 }
 0x12c   :  { %v192_v37 = vpop.f32.mrb[1].mxu0  ;;  %v199_v39 = vmax.f32 %v190_v36, 0.0 }
 0x12d   :  { %v194_v38 = vpop.f32.mrb[2].mxu0  ;;  %v200_v42 = vmax.f32 %v192_v37, 0.0 }
 0x12e   :  { %v201_v40 = vmax.f32 %v194_v38, 0.0  ;;  %v196_v41 = vpop.f32.mrb[3].mxu0 }
 0x12f   :  { %v202_v43 = vmax.f32 %v196_v41, 0.0 }
 0x130   :  { %v203_v44 = vpack.c.bf16 %v201_v40, %v199_v39 }
 0x131   :  { %v204_v45 = vpack.c.bf16 %v202_v43, %v200_v42 }
 0x133   :  { %365 = vmatprep.mubr.bf16.mxu1 %v204_v45 }
 0x134   :  { %366 = vmatmul.mubr.bf16.vlgmr.msra.gmra.mrb[0].mxu1 %v203_v44 }
 0x207   :  { %v442_v46 = vpop.f32.mrb[0].mxu1 }
 0x208   :  { %v443_v47 = vpop.f32.mrb[1].mxu1 }
 0x209   :  { %v444_v48 = vadd.f32 %v443_v47, %v442_v46  ;;  %v445_v49 = vpop.f32.mrb[2].mxu1 }
 0x20a   :  { %v446_v50 = vpop.f32.mrb[3].mxu1 }
 0x20b   :  { %374 = vst [vmem:[#allocation8] sm:$0xff] %v444_v48  ;;  %v447_v51 = vadd.f32 %v446_v50, %v445_v49 }
 0x20d   :  { %375 = vst [vmem:[#allocation8 + $0x8] sm:$0xff] %v447_v51 }
 0x20e   :  { %574 = shalt.err (!%p571_p0)
}
 0x20f   :  { %s575_s29 = scalar_lea.hbm %s687_s3, 256 }
 0x210   :  { %p576_p1 = scmp.ne.s32.totalorder %s687_s3, %s575_s29  ;;  %p579_p2 = scmp.lt.u32.totalorder %s575_s29, %s687_s3 }
 0x212   :  { %p581_p3 = pnand %p579_p2, %p576_p1 }
 0x214   :  { %584 = shalt.err (!%p581_p3)
}
 0x215   :  { %387 = dma.vmem_to_hbm [thread:$0]  %s382_s23, 256, %s687_s3, [#allocation4], %s593_s24, %s593_s24, %s594_s25  }
 0x216   :  { %589 = dma.done.wait [#allocation4], 256  }
 0x217   :  { %590 = vsyncadd [#allocation4], 4294967040 }
 0x218   :  { %391 = vsyncpa [#allocation3], 1 }
 0x219   :  { %392 = vsyncpa [#allocation6], 1 }
 0x21a   :  { %393 = vsyncpa [#allocation4], 1 }

</bundles_post_ra>
